<compile_context>
chip_gen: v7x
topology: tpu7x:2x2x1
jax: 0.10.0
libtpu: 0.0.40
codegen_flags: <defaults>
</compile_context>

<pallas_src>
import math
import functools

import jax
import jax.numpy as jnp
from jax.experimental import pallas as pl
from jax.experimental.pallas import tpu as pltpu


def _prescale_norm_kernel(g_ref, x_ref, o_ref, *, eps):
    # g_ref: SMEM (1,) scalar prefetch (learnable scale g)
    # x_ref: (tm, dim) input rows      o_ref: (tm, dim) output rows
    x = x_ref[...].astype(jnp.float32)
    sumsq = jnp.sum(x * x, axis=-1, keepdims=True)              # (tm, 1)
    # max(sqrt(ss), eps) == sqrt(max(ss, eps^2)); rsqrt fuses sqrt + divide.
    scale = g_ref[0] * jax.lax.rsqrt(jnp.maximum(sumsq, eps * eps))
    o_ref[...] = (x * scale).astype(o_ref.dtype)


def _round_up(x, m):
    return ((x + m - 1) // m) * m


# Packed sublane multiple per itemsize (f32 -> 8, bf16 -> 16, int8/fp8 -> 32).
_PACKED_SUBLANE = {4: 8, 2: 16, 1: 32}


@functools.partial(jax.jit, static_argnames=("eps", "tm", "block_bytes"))
def pre_scale_norm_pallas(x, g, *, eps=1e-5, tm=None, block_bytes=2 << 20):
    """x: (..., dim). g: scalar (shape (1,) or ()). Returns x / max(||x||, eps) * g.

    Caller contract: pass the full model dim as the last axis (lane-dense,
    ideally a multiple of 128) — reshape per-head splits away before calling.
    """
    orig_shape = x.shape
    dim = orig_shape[-1]
    n = math.prod(orig_shape[:-1])
    x2 = x.reshape(n, dim)

    itemsize = jnp.dtype(x.dtype).itemsize
    sub = _PACKED_SUBLANE.get(itemsize, 8)
    row_bytes = dim * itemsize

    # Row tile from a VMEM byte budget (~1-2 MiB blocks hit the measured
    # HBM-roofline sweet spot), rounded to the packed sublane multiple.
    if tm is None:
        tm_eff = max(sub, (block_bytes // row_bytes) // sub * sub)
    else:
        tm_eff = max(sub, _round_up(int(tm), sub))
    n_ceil = _round_up(n, sub)
    tm_eff = min(tm_eff, n_ceil)
    # v7x megacore: keep the row grid multi-step when the row count allows it,
    # so both TensorCores get row blocks to stream.
    if tm_eff >= n_ceil and n > sub:
        tm_eff = max(sub, _round_up(pl.cdiv(n, 2), sub))
    grid = (pl.cdiv(n, tm_eff),)

    # VMEM footprint: double-buffered input + output blocks, plus f32 temps
    # for the upcast / squared tile. Leave headroom under v7x's 64 MiB.
    blk = tm_eff * dim * itemsize
    vmem_need = 4 * blk + 2 * tm_eff * dim * 4 + (1 << 20)
    vmem_limit = int(min(max(vmem_need, 16 << 20), 40 << 20))

    # TODO(synk): for very large dim (>= ~8-16K) add a trailing "arbitrary"
    # grid axis over dim with a (tm, 1) f32 sumsq scratch accumulator instead
    # of shrinking tm; not needed for Performer-scale dims.

    g1 = jnp.asarray(g, jnp.float32).reshape(1)

    out2 = pl.pallas_call(
        functools.partial(_prescale_norm_kernel, eps=float(eps)),
        out_shape=jax.ShapeDtypeStruct((n, dim), x.dtype),
        grid_spec=pltpu.PrefetchScalarGridSpec(
            num_scalar_prefetch=1,                      # g lands in SMEM
            grid=grid,
            in_specs=[pl.BlockSpec((tm_eff, dim), lambda i, g_s: (i, 0))],
            out_specs=pl.BlockSpec((tm_eff, dim), lambda i, g_s: (i, 0)),
        ),
        compiler_params=pltpu.CompilerParams(
            dimension_semantics=("parallel",),
            vmem_limit_bytes=vmem_limit,
        ),
        cost_estimate=pl.CostEstimate(
            flops=3 * n * dim,                 # square, reduce, scale
            transcendentals=n,                 # rsqrt per row
            bytes_accessed=2 * n * dim * itemsize + 4,
        ),
    )(g1, x2)

    return out2.reshape(orig_shape)


def pre_scale_norm_apply(x, g, fn=None, *, eps=1e-5, tm=None, **kwargs):
    """Full PreScaleNorm.forward: fn(scale_norm(x), **kwargs)."""
    y = pre_scale_norm_pallas(x, g, eps=eps, tm=tm)
    # TODO(synk): `fn` is the arbitrary wrapped sub-module (attention/FFN in
    # Performer) and runs as a plain JAX callable on the kernel output. When
    # fn's first op is a matmul, the per-row scale should instead be fused
    # onto the LHS tile inside that consumer kernel to drop this kernel's
    # entire HBM round trip.
    if fn is None:
        return y
    return fn(y, **kwargs)


def _reference(x, g, eps=1e-5):
    n = jnp.linalg.norm(x, axis=-1, keepdims=True)
    n = jnp.maximum(n, eps)
    return x / n * jnp.asarray(g, x.dtype).reshape(())


if __name__ == "__main__":
    key = jax.random.PRNGKey(0)
    kx, kx2, kx3, kg = jax.random.split(key, 4)

    # Small, lane-dense demo shape: (batch, seq, dim) = (2, 8, 128).
    batch, seq, dim = 2, 8, 128
    x = jax.random.normal(kx, (batch, seq, dim), jnp.float32)
    # Module init is g = ones(1); use a nontrivial deterministic value to
    # actually exercise the scale.
    g = jax.random.uniform(kg, (1,), jnp.float32, 0.5, 1.5)

    out = pre_scale_norm_apply(x, g)                 # fn = identity
    out = jax.block_until_ready(out)
    ref = _reference(x, g)
    assert out.shape == x.shape
    assert jnp.allclose(out, ref, atol=1e-5, rtol=1e-5), "mismatch vs reference"

    # Ragged row count -> partial (write-masked) last block, non-identity fn.
    x_r = jax.random.normal(kx2, (2, 7, dim), jnp.float32)
    fn = lambda t: t * 2.0 + 1.0
    out_r = jax.block_until_ready(pre_scale_norm_apply(x_r, g, fn=fn))
    ref_r = fn(_reference(x_r, g))
    assert jnp.allclose(out_r, ref_r, atol=1e-5, rtol=1e-5), "ragged mismatch"

    # bf16 path (exercises packed sublane multiple = 16).
    x_b = jax.random.normal(kx3, (4, 24, dim), jnp.float32).astype(jnp.bfloat16)
    out_b = jax.block_until_ready(pre_scale_norm_pallas(x_b, g))
    ref_b = _reference(x_b.astype(jnp.float32), g)
    assert jnp.allclose(out_b.astype(jnp.float32), ref_b, atol=2e-2, rtol=2e-2), (
        "bf16 mismatch")

    print("KERNEL_OK")
</pallas_src>

<mosaic_0001>
module attributes {stable_mosaic.version = 11 : i64} {
  func.func @_prescale_norm_kernel(%arg0: i32, %arg1: memref<1xf32, #tpu.memory_space<smem>>, %arg2: memref<8x128xf32, #tpu.memory_space<vmem>>, %arg3: memref<8x128xf32, #tpu.memory_space<vmem>>) attributes {dimension_semantics = [#tpu.dimension_semantics<parallel>], iteration_bounds = array<i64: 2>, scalar_prefetch = 1 : i64, scratch_operands = 0 : i64, tpu.core_type = #tpu.core_type<tc>, window_params = [{transform_indices = @transform_0, window_bounds = array<i64: 8, 128>}, {transform_indices = @transform_1, window_bounds = array<i64: 8, 128>}]} {
    %c0 = arith.constant 0 : index
    %c0_0 = arith.constant 0 : index
    %0 = vector.load %arg2[%c0, %c0_0] : memref<8x128xf32, #tpu.memory_space<vmem>>, vector<8x128xf32>
    %1 = arith.mulf %0, %0 : vector<8x128xf32>
    %cst = arith.constant dense<0.000000e+00> : vector<8xf32>
    %2 = vector.multi_reduction <add>, %1, %cst [1] : vector<8x128xf32> to vector<8xf32>
    %3 = vector.shape_cast %2 : vector<8xf32> to vector<8x1xf32>
    %c0_1 = arith.constant 0 : index
    %4 = memref.load %arg1[%c0_1] : memref<1xf32, #tpu.memory_space<smem>>
    %cst_2 = arith.constant 1.000000e-10 : f32
    %5 = vector.broadcast %cst_2 : f32 to vector<8x1xf32>
    %6 = arith.maximumf %3, %5 : vector<8x1xf32>
    %7 = math.rsqrt %6 : vector<8x1xf32>
    %8 = vector.broadcast %4 : f32 to vector<8x1xf32>
    %9 = arith.mulf %8, %7 : vector<8x1xf32>
    %10 = vector.broadcast %9 : vector<8x1xf32> to vector<8x128xf32>
    %11 = arith.mulf %0, %10 : vector<8x128xf32>
    %c0_3 = arith.constant 0 : index
    %c0_4 = arith.constant 0 : index
    %12 = vector.load %arg3[%c0_3, %c0_4] : memref<8x128xf32, #tpu.memory_space<vmem>>, vector<8x128xf32>
    tpu.vector_store %arg3[%c0_3, %c0_4], %11 {strides = array<i32>} : memref<8x128xf32, #tpu.memory_space<vmem>>, vector<8x128xf32>,
    return
  }
  func.func @transform_0(%arg0: i32, %arg1: memref<1xf32, #tpu.memory_space<smem>>) -> (i32, i32) {
    %c0_i32 = arith.constant 0 : i32
    %c0_i32_0 = arith.constant 0 : i32
    return %arg0, %c0_i32 : i32, i32
  }
  func.func @transform_1(%arg0: i32, %arg1: memref<1xf32, #tpu.memory_space<smem>>) -> (i32, i32) {
    %c0_i32 = arith.constant 0 : i32
    %c0_i32_0 = arith.constant 0 : i32
    return %arg0, %c0_i32 : i32, i32
  }
}

</mosaic_0001>

<bundles_post_ra>
// kernel: pre_scale_norm_pallas.1
= control target key start
LH: loop header
LB: loop body
LE: loop exit
PB: predicated region body
PF: predicated region fallthrough
CT: control target
= control target key end

     0   :  { %s568_s0 = inlined_call_operand.<no memory space> [shape: f32[1], index: 0, kind: input, shape index: {}]   ;;  %s569_s1 = inlined_call_operand.hbm [shape: f32[16,128], index: 1, kind: input, shape index: {}]   ;;  %s570_s2 = inlined_call_operand.hbm [shape: f32[16,128], index: 2, kind: output, shape index: {}]  }
   0x1   :  { %7 = sst [smem:[#allocation3]] %s568_s0 }
   0x2   :  { %8 = vsyncpa [#allocation5], 0 }
   0x3   :  { %10 = vsyncpa [#allocation5 + $0x1], 0 }
   0x4   :  { %11 = vsyncpa [#allocation6], 0 }
   0x5   :  { %13 = vsyncpa [#allocation6 + $0x1], 0  ;;  %s407_s11 = smov 0   ;;  %s409_s12 = smov 0  }
   0x6   :  { %s411_s13 = smov 0   ;;  %s413_s14 = smov 0  }
   0x7 LB: > { %s428_s0 = sadd.s32 4294967295, %s385_s14   ;;  %s229_s15 = sadd.s32 4294967294, %s385_s14   ;;  %s385_s14 = sphi %s413_s14, %s585_s14   ;;  %s381_s13 = sphi %s411_s13, %s584_s13   ;;  %s377_s12 = sphi %s409_s12, %s583_s12   ;;  %s373_s11 = sphi %s407_s11, %s582_s11  }
   0x8   : > { %s432_s16 = sadd.s32 1, %s385_s14   ;;  %s26_s17 = sadd.s32 1, %s381_s13 }
   0x9   : > { %s23_s18 = ssub.s32 %s385_s14, %s432_s16  ;;  %p33_p0 = scmp.ne.s32.totalorder %s381_s13, %s377_s12 }
   0xa   : > { %p24_p1 = scmp.eq.s32.totalorder %s23_s18, 0  ;;  %p34_p2 = scmp.eq.s32.totalorder %s385_s14, 0 }
   0xb   : > { %p39_p3 = scmp.ne.s32.totalorder %s377_s12, %s373_s11  ;;  %p40_p4 = scmp.eq.s32.totalorder %s428_s0, 0 }
   0xc   : > { %s444_s19 = scalar_select %p24_p1, %s381_s13, %s26_s17  }
   0xd   : > { %p446_p5 = por %p34_p2, %p33_p0  ;;  %p450_p6 = por %p40_p4, %p39_p3 }
   0xe   : > { %p63_p7 = scmp.eq.s32.totalorder %s428_s0, 1  ;;  %p69_p8 = scmp.eq.s32.totalorder %s229_s15, 1 }
   0xf   : > { %p253_p10 = scmp.lt.s32.totalorder %s385_s14, 2  ;;  %s89_s24 = sand.u32 1, %s381_s13  }
  0x10   : > { %p457_p11 = por %p63_p7, %p33_p0  ;;  %p461_p12 = por %p69_p8, %p39_p3 }
  0x11   : > { %s233_s25 = sshll.u32 %s385_s14, 7  ;;  %s232_s26 = sshll.u32 %s89_s24, 3 }
  0x12   : > { %s574_s22 = scalar_select %p457_p11, 1, 0 }
  0x13   : > { %s575_s23 = scalar_select %p461_p12, 1, 0 }
  0x14   : > { %s470_s29 = scalar_lea.hbm %s569_s1, %s233_s25  ;;  %s93_s30 = scalar_lea.vmem [#allocation4], %s232_s26 }
  0x15   : > { %s100_s3 = sshll.u32 %s93_s30, 4  ;;  %p474_p13 = pnand %p253_p10, %p446_p5  ;;  %s478_s3 = int_to_ptr.vmem [resolvable:$true] %s100_s3 }
  0x16   : > { %s90_s5 = scalar_lea.sflag [#allocation5], %s89_s24  ;;  %s289_s6 = scalar_lea.hbm %s470_s29, 128 }
  0x17   : > { %p290_p2 = scmp.ne.s32.totalorder %s470_s29, %s289_s6  ;;  %p291_p3 = pneg %p474_p13 }
  0x18   : > { %s294_s9 = scalar_lea.hbm %s569_s1, 256  ;;  %p295_p5 = scmp.lt.u32.totalorder %s470_s29, %s569_s1 }
  0x19   : > { %p292_p4 = pnand %p291_p3, %p290_p2  ;;  %p296_p8 = scmp.lt.u32.totalorder %s294_s9, %s289_s6 }
  0x1a   : > { %p298_p9 = scmp.lt.u32.totalorder %s289_s6, %s470_s29 }
  0x1b   : > { %p293_p7 = pneg %p292_p4  ;;  %p297_p10 = por %p296_p8, %p295_p5 }
  0x1d   : > { %p299_p0 = por %p298_p9, %p297_p10 }
  0x1f   : > { %p300_p1 = pnand %p299_p0, %p293_p7 }
  0x21   : > { %303 = shalt.err (!%p300_p1)
}
  0x22   : > { %s304_s17 = scalar_lea.vmem %s478_s3, 128  ;;  %s387_s18 = smov [#allocation4]  }
  0x23   : > { %p305_p2 = scmp.ne.s32.totalorder %s478_s3, %s304_s17  ;;  %s309_s20 = sshll.u32 %s387_s18, 4  ;;  %s310_s20 = int_to_ptr.vmem [resolvable:$false] %s309_s20 }
  0x24   : > { %s311_s24 = scalar_lea.vmem %s310_s20, 256  ;;  %p312_p11 = scmp.lt.s32.totalorder %s478_s3, %s310_s20 }
  0x25   : > { %p307_p4 = pnand %p305_p2, %p291_p3  ;;  %p313_p5 = scmp.lt.s32.totalorder %s311_s24, %s304_s17 }
  0x27   : > { %p308_p12 = pneg %p307_p4  ;;  %p314_p8 = por %p313_p5, %p312_p11 }
  0x29   : > { %p315_p9 = pnand %p314_p8, %p308_p12 }
  0x2b   : > { %318 = shalt.err (!%p315_p9)
}
  0x2c   : > { %248 = dma.hbm_to_vmem [thread:$0]  (!%p474_p13), %s470_s29, 128, %s478_s3, %s90_s5  }
  0x2d   : > { %p577_p0 = scmp.lt.s32.totalorder %s385_s14, 3  ;;  %p578_p1 = scmp.ge.s32.totalorder %s385_s14, 1 }
  0x2f   : > { %p106_p3 = pnand %p578_p1, %p577_p0 }
  0x30   : > { %s512_s25 = sand.u32 (!%p106_p3), 1, %s377_s12  }
  0x31   : > { %109 = sbr.rel (%p106_p3) target bundleno = 233 (0xe9), region = 24  ;;  %s235_s26 = sshll.u32 (!%p106_p3), %s512_s25, 3 }
  0x32   : > { %s112_s27 = scalar_lea.sflag (!%p106_p3), [#allocation5], %s512_s25  ;;  %s115_s28 = scalar_lea.vmem (!%p106_p3), [#allocation4], %s235_s26 }
  0x38   : > { %364 = dma.done.wait (%p450_p6), %s112_s27, 128  }
  0x39   : > { %366 = vsyncadd (%p450_p6), %s112_s27, 4294967168  ;;  %v134_v0 = vld [vmem:[%s115_s28] sm:$0xff]  ;;  %s138_s29 = sld [smem:[#allocation3]]  ;;  %s238_s30 = sshll.u32 %s428_s0, 7 }
  0x3a   : > { %v135_v1 = vmul.f32 %v134_v0, %v134_v0  ;;  %s133_s3 = scalar_lea.vmem [#allocation7], %s235_s26  ;;  %s524_s6 = scalar_lea.hbm %s570_s2, %s238_s30 }
  0x3b   : > { %s159_s4 = sshll.u32 %s133_s3, 4  ;;  %s146_s7 = scalar_lea.sflag [#allocation6], %s512_s25  ;;  %s526_s4 = int_to_ptr.vmem [resolvable:$true] %s159_s4 }
  0x3c   : > { %136 = vadd.xlane.f32.xlu0 %v135_v1  ;;  %s319_s8 = scalar_lea.vmem %s526_s4, 128  ;;  %p579_p11 = scmp.ne.s32.totalorder %s574_s22, 0 }
  0x3d   : > { %p320_p6 = scmp.ne.s32.totalorder %s526_s4, %s319_s8  ;;  %s388_s0 = smov [#allocation7]  }
  0x3e   : > { %s323_s9 = sshll.u32 %s388_s0, 4  ;;  %s324_s9 = int_to_ptr.vmem [resolvable:$false] %s323_s9 }
  0x3f   : > { %v141_v4 = vstv %s138_s29  ;;  %p321_p12 = pnand %p320_p6, %p579_p11  ;;  %s325_s10 = scalar_lea.vmem %s324_s9, 256 }
  0x40   : > { %p326_p7 = scmp.lt.s32.totalorder %s526_s4, %s324_s9  ;;  %p327_p10 = scmp.lt.s32.totalorder %s325_s10, %s319_s8 }
  0x41   : > { %p322_p13 = pneg %p321_p12 }
  0x42   : > { %p328_p2 = por %p327_p10, %p326_p7 }
  0x44   : > { %p329_p4 = pnand %p328_p2, %p322_p13 }
  0xc9   : > { %v137_v2 = vpop.xlane.xlu0 %136 }
  0xca   : > { %v139_v3 = vmax.f32 %v137_v2, 1e-10 }
  0xcc   : > { %287 = vrsqrt.f32 %v139_v3 }
  0xd6   : > { %v288_v5 = vpop.eup %287 }
  0xd7   : > { %v142_v6 = vmul.f32 %v288_v5, %v141_v4 }
  0xd9   : > { %v143_v7 = vmul.f32 %v142_v6, %v134_v0 }
  0xdb   : > { %144 = vst [vmem:[%s133_s3] sm:$0xff] %v143_v7 }
  0xdc   : > { %332 = shalt.err (!%p329_p4)
}
  0xdd   : > { %s333_s15 = scalar_lea.hbm %s524_s6, 128  ;;  %s337_s20 = scalar_lea.hbm %s570_s2, 256 }
  0xde   : > { %p334_p5 = scmp.ne.s32.totalorder %s524_s6, %s333_s15  ;;  %p338_p0 = scmp.lt.u32.totalorder %s524_s6, %s570_s2 }
  0xdf   : > { %p339_p1 = scmp.lt.u32.totalorder %s337_s20, %s333_s15  ;;  %p341_p6 = scmp.lt.u32.totalorder %s333_s15, %s524_s6 }
  0xe0   : > { %p335_p8 = pnand %p334_p5, %p579_p11 }
  0xe1   : > { %p340_p3 = por %p339_p1, %p338_p0 }
  0xe2   : > { %p336_p9 = pneg %p335_p8 }
  0xe3   : > { %p342_p12 = por %p341_p6, %p340_p3 }
  0xe5   : > { %p343_p13 = pnand %p342_p12, %p336_p9 }
  0xe7   : > { %346 = shalt.err (!%p343_p13)
}
  0xe8   : > { %243 = dma.vmem_to_hbm [thread:$0]  (%p579_p11), %s526_s4, 128, %s524_s6, %s146_s7  }
  0xe9 PF: > { %s171_s26 = sand.u32 1, %s373_s11   ;;  %p580_p7 = scmp.ne.s32.totalorder %s575_s23, 0 }
  0xea   : > { %p581_p10 = scmp.ge.s32.totalorder %s385_s14, 2  ;;  %s172_s27 = scalar_lea.sflag [#allocation6], %s171_s26 }
  0xec   : > { %p250_p2 = pnand %p581_p10, %p580_p7 }
  0xee   : > { %368 = dma.done.wait (!%p250_p2), %s172_s27, 128  }
  0xef   : > { %370 = vsyncadd (!%p250_p2), %s172_s27, 4294967168  ;;  %p16_p4 = scmp.ge.s32.totalorder %s432_s16, 4   ;;  %s582_s11 = smov %s377_s12 }
  0xf0   : > { %s583_s12 = smov %s381_s13  ;;  %s584_s13 = smov %s444_s19 }
  0xf1   : > { %s585_s14 = smov %s432_s16  ;;  %18 = sbr.rel (!%p16_p4) target bundleno = 7 (0x7), region = 69 }
  0xf8   :  { %177 = vsyncpa [#allocation5], 1 }
  0xf9   :  { %179 = vsyncpa [#allocation5 + $0x1], 1 }
  0xfa   :  { %180 = vsyncpa [#allocation6], 1 }
  0xfb   :  { %182 = vsyncpa [#allocation6 + $0x1], 1 }

</bundles_post_ra>
